<compile_context>
chip_gen: v7x
topology: tpu7x:2x2x1
jax: 0.10.0
libtpu: 0.0.40
codegen_flags: <defaults>
</compile_context>

<pallas_src>
import functools
from typing import NamedTuple

import jax
import jax.numpy as jnp
from jax.experimental import pallas as pl
from jax.experimental.pallas import tpu as pltpu

HIDDEN = 12
LANES = 128
_SEG = 16           # bf16 sublane-tile height; slab segments are 16-row aligned
_BIAS_STRIDE = 16   # one bias row per (16,128) tile -> no sublane selects
_SPLIT_MIN = 1024   # below this batch size a single block is fastest


def _round_up(x, m):
    return (x + m - 1) // m * m


class QAgentMeta(NamedTuple):
    state_size: int
    action_size: int
    r_w2: int
    r_w3: int
    r_w4: int
    r_b: int
    rows: int


# --------------------------------------------------------------------------
# Parameter packing (done once, outside the per-step forward path)
# --------------------------------------------------------------------------
def pack_params(params):
    """Pack pre-transposed weights + biases into one lane-dense bf16 slab.

    Row layout (all segments zero-padded to 128 lanes, 16-row aligned):
      [0      : S)                 w1.T  (S, 12)
      [r_w2   : r_w2+12)           w2.T  (12, 12)   segment is 128 rows
      [r_w3   : r_w3+12)           w3.T  (12, 12)   segment is 128 rows
      [r_w4   : r_w4+12)           w4.T  (12, A)    segment is 128 rows
      [r_b + 16*k]                 b_{k+1}          one bias row per 16-row tile
    Zero padding is exact: padded hidden lanes stay 0 through Linear+ReLU.
    """
    S = params["w1"].shape[1]
    A = params["w4"].shape[0]
    H = HIDDEN

    n1 = _round_up(S, _SEG)
    r_w2 = n1
    r_w3 = r_w2 + LANES
    r_w4 = r_w3 + LANES
    r_b = r_w4 + LANES
    rows = r_b + 4 * _BIAS_STRIDE

    slab = jnp.zeros((rows, LANES), jnp.float32)
    slab = slab.at[0:S, 0:H].set(params["w1"].T.astype(jnp.float32))
    slab = slab.at[r_w2:r_w2 + H, 0:H].set(params["w2"].T.astype(jnp.float32))
    slab = slab.at[r_w3:r_w3 + H, 0:H].set(params["w3"].T.astype(jnp.float32))
    slab = slab.at[r_w4:r_w4 + H, 0:A].set(params["w4"].T.astype(jnp.float32))
    slab = slab.at[r_b + 0 * _BIAS_STRIDE, 0:H].set(params["b1"].astype(jnp.float32))
    slab = slab.at[r_b + 1 * _BIAS_STRIDE, 0:H].set(params["b2"].astype(jnp.float32))
    slab = slab.at[r_b + 2 * _BIAS_STRIDE, 0:H].set(params["b3"].astype(jnp.float32))
    slab = slab.at[r_b + 3 * _BIAS_STRIDE, 0:A].set(params["b4"].astype(jnp.float32))
    slab = slab.astype(jnp.bfloat16)   # bf16 operands, f32 accumulation in-kernel

    meta = QAgentMeta(state_size=S, action_size=A,
                      r_w2=r_w2, r_w3=r_w3, r_w4=r_w4, r_b=r_b, rows=rows)
    return slab, meta


# --------------------------------------------------------------------------
# Kernel bodies: whole 4-layer MLP on one batch tile, params resident in VMEM
# --------------------------------------------------------------------------
def _mlp_qvalues(x_ref, p_ref, *, S, r_w2, r_w3, r_w4, r_b):
    """Returns f32 (TB, 128) Q-values (lanes >= action_size are zero)."""
    x = x_ref[...].astype(jnp.bfloat16)                        # (TB, S) bf16

    def bias(k):  # (1, 128) bf16, tile-aligned row -> broadcast add in f32
        row = r_b + k * _BIAS_STRIDE
        return p_ref[row:row + 1, :]

    # stage1 + ReLU   (weights pre-transposed: (S, 128) slice, no .T)
    h = jnp.dot(x, p_ref[0:S, :], preferred_element_type=jnp.float32)
    h = jnp.maximum(h + bias(0), 0.0)                          # f32 (TB, 128)

    # stage2 + ReLU
    h = jnp.dot(h.astype(jnp.bfloat16), p_ref[r_w2:r_w2 + LANES, :],
                preferred_element_type=jnp.float32)
    h = jnp.maximum(h + bias(1), 0.0)

    # stage3 + ReLU
    h = jnp.dot(h.astype(jnp.bfloat16), p_ref[r_w3:r_w3 + LANES, :],
                preferred_element_type=jnp.float32)
    h = jnp.maximum(h + bias(2), 0.0)

    # stage4 (no activation)
    q = jnp.dot(h.astype(jnp.bfloat16), p_ref[r_w4:r_w4 + LANES, :],
                preferred_element_type=jnp.float32)
    return q + bias(3)


def _qvalues_kernel(x_ref, p_ref, o_ref, **mk):
    o_ref[...] = _mlp_qvalues(x_ref, p_ref, **mk)


def _maxq_kernel(x_ref, p_ref, o_ref, *, A, **mk):
    q = _mlp_qvalues(x_ref, p_ref, **mk)
    lane = jax.lax.broadcasted_iota(jnp.int32, q.shape, 1)
    q = jnp.where(lane < A, q, -jnp.inf)                       # mask padded lanes
    o_ref[...] = jnp.max(q, axis=-1, keepdims=True)            # (TB, 1)


# --------------------------------------------------------------------------
# Batch tiling
# --------------------------------------------------------------------------
def _batch_tiles(B, max_rows):
    """Pick (tile_rows, num_blocks, padded_batch) with bounded padding waste."""
    if B <= min(_SPLIT_MIN, max_rows):
        TB = _round_up(B, 8)          # one block: tiny work, one launch
        nblocks = 1
    else:
        nblocks = max(2, -(-B // max_rows))
        nblocks += nblocks % 2        # even #blocks -> both v7x TensorCores busy
        TB = _round_up(-(-B // nblocks), 8)
    return TB, nblocks, TB * nblocks


# --------------------------------------------------------------------------
# Wrappers (jitted: pad + pallas_call + slice are one dispatch)
# --------------------------------------------------------------------------
@functools.partial(jax.jit, static_argnames=("meta", "max_rows_per_block"))
def qagent_forward(state, slab, *, meta, max_rows_per_block=2048):
    """state: (B, state_size) f32. Returns Q-values (B, action_size) f32."""
    B, S = state.shape
    assert S == meta.state_size
    A = meta.action_size

    TB, nblocks, Bp = _batch_tiles(B, max_rows_per_block)
    if Bp != B:
        state = jnp.pad(state, ((0, Bp - B), (0, 0)))

    kernel = functools.partial(
        _qvalues_kernel, S=S, r_w2=meta.r_w2, r_w3=meta.r_w3,
        r_w4=meta.r_w4, r_b=meta.r_b)

    out = pl.pallas_call(
        kernel,
        out_shape=jax.ShapeDtypeStruct((Bp, LANES), jnp.float32),
        grid=(nblocks,),
        in_specs=[
            pl.BlockSpec((TB, S), lambda i: (i, 0)),                 # state tile
            pl.BlockSpec((meta.rows, LANES), lambda i: (0, 0)),      # params (resident)
        ],
        out_specs=pl.BlockSpec((TB, LANES), lambda i: (i, 0)),
        compiler_params=pltpu.CompilerParams(
            dimension_semantics=("parallel",)),
    )(state, slab)

    return out[:B, :A]


@functools.partial(jax.jit, static_argnames=("meta", "max_rows_per_block"))
def qagent_forward_maxq(state, slab, *, meta, max_rows_per_block=2048):
    """Fused max-over-actions Q (greedy value / TD max-next-Q). Returns (B,) f32.

    Writes a (B, 1)-packed result instead of the 128-lane padded Q slab,
    cutting output HBM writeback ~64x for large-batch scoring."""
    B, S = state.shape
    assert S == meta.state_size
    A = meta.action_size

    TB, nblocks, Bp = _batch_tiles(B, max_rows_per_block)
    if Bp != B:
        state = jnp.pad(state, ((0, Bp - B), (0, 0)))

    kernel = functools.partial(
        _maxq_kernel, A=A, S=S, r_w2=meta.r_w2, r_w3=meta.r_w3,
        r_w4=meta.r_w4, r_b=meta.r_b)

    out = pl.pallas_call(
        kernel,
        out_shape=jax.ShapeDtypeStruct((Bp, 1), jnp.float32),
        grid=(nblocks,),
        in_specs=[
            pl.BlockSpec((TB, S), lambda i: (i, 0)),
            pl.BlockSpec((meta.rows, LANES), lambda i: (0, 0)),
        ],
        out_specs=pl.BlockSpec((TB, 1), lambda i: (i, 0)),
        compiler_params=pltpu.CompilerParams(
            dimension_semantics=("parallel",)),
    )(state, slab)

    return out[:B, 0]


# --------------------------------------------------------------------------
# Init + references
# --------------------------------------------------------------------------
def init_params(key, state_size, action_size):
    """Deterministic init mimicking nn.Linear default (uniform +/- 1/sqrt(fan_in))."""
    ks = jax.random.split(key, 8)

    def linear(kw, kb, out_f, in_f):
        bound = 1.0 / jnp.sqrt(jnp.float32(in_f))
        w = jax.random.uniform(kw, (out_f, in_f), jnp.float32, -bound, bound)
        b = jax.random.uniform(kb, (out_f,), jnp.float32, -bound, bound)
        return w, b

    w1, b1 = linear(ks[0], ks[1], HIDDEN, state_size)
    w2, b2 = linear(ks[2], ks[3], HIDDEN, HIDDEN)
    w3, b3 = linear(ks[4], ks[5], HIDDEN, HIDDEN)
    w4, b4 = linear(ks[6], ks[7], action_size, HIDDEN)
    return dict(w1=w1, b1=b1, w2=w2, b2=b2, w3=w3, b3=b3, w4=w4, b4=b4)


def reference_forward(state, p):
    h = jnp.maximum(state @ p["w1"].T + p["b1"], 0.0)
    h = jnp.maximum(h @ p["w2"].T + p["b2"], 0.0)
    h = jnp.maximum(h @ p["w3"].T + p["b3"], 0.0)
    return h @ p["w4"].T + p["b4"]


def reference_forward_bf16(state, p):
    """Emulates the kernel numerics: bf16 matmul operands, f32 accumulate/bias/ReLU."""
    def lin(x, w, b):
        y = jnp.dot(x.astype(jnp.bfloat16), w.T.astype(jnp.bfloat16),
                    preferred_element_type=jnp.float32)
        return y + b.astype(jnp.bfloat16).astype(jnp.float32)

    h = jnp.maximum(lin(state, p["w1"], p["b1"]), 0.0)
    h = jnp.maximum(lin(h, p["w2"], p["b2"]), 0.0)
    h = jnp.maximum(lin(h, p["w3"], p["b3"]), 0.0)
    return lin(h, p["w4"], p["b4"])


if __name__ == "__main__":
    state_size = 4
    action_size = 2
    batch = 32  # matches agent.batch_size

    key = jax.random.PRNGKey(0)
    k_params, k_state = jax.random.split(key)
    params = init_params(k_params, state_size, action_size)
    slab, meta = pack_params(params)          # packed once, reused every step
    state = jax.random.normal(k_state, (batch, state_size), jnp.float32)

    out = jax.block_until_ready(qagent_forward(state, slab, meta=meta))
    ref32 = reference_forward(state, params)
    ref16 = reference_forward_bf16(state, params)
    assert out.shape == (batch, action_size)
    assert jnp.allclose(out, ref16, atol=1e-3, rtol=1e-3)      # exact-path check
    assert jnp.allclose(out, ref32, atol=5e-2, rtol=5e-2)      # bf16 vs f32 params

    # single-state path (select_action-style) exercises the batch-padding path
    out1 = jax.block_until_ready(qagent_forward(state[:1], slab, meta=meta))
    assert jnp.allclose(out1, ref16[:1], atol=1e-3, rtol=1e-3)

    # fused max-over-actions variant (TD max-next-Q / greedy action value)
    mq = jax.block_until_ready(qagent_forward_maxq(state, slab, meta=meta))
    assert mq.shape == (batch,)
    assert jnp.allclose(mq, jnp.max(ref16[:, :action_size], axis=-1),
                        atol=1e-3, rtol=1e-3)

    print("KERNEL_OK")
</pallas_src>

<mosaic_0001>
module attributes {stable_mosaic.version = 11 : i64} {
  func.func @_qvalues_kernel(%arg0: i32, %arg1: memref<32x4xf32, #tpu.memory_space<vmem>>, %arg2: memref<464x128xbf16, #tpu.memory_space<vmem>>, %arg3: memref<32x128xf32, #tpu.memory_space<vmem>>) attributes {dimension_semantics = [#tpu.dimension_semantics<parallel>], iteration_bounds = array<i64: 1>, scalar_prefetch = 0 : i64, scratch_operands = 0 : i64, tpu.core_type = #tpu.core_type<tc>, window_params = [{transform_indices = @transform_0, window_bounds = array<i64: 32, 4>}, {pipeline_mode = #tpu.pipeline_mode<synchronous>, transform_indices = @transform_1, window_bounds = array<i64: 464, 128>}, {transform_indices = @transform_2, window_bounds = array<i64: 32, 128>}]} {
    %c0 = arith.constant 0 : index
    %c0_0 = arith.constant 0 : index
    %0 = vector.load %arg1[%c0, %c0_0] : memref<32x4xf32, #tpu.memory_space<vmem>>, vector<32x4xf32>
    %1 = arith.truncf %0 : vector<32x4xf32> to vector<32x4xbf16>
    %c0_1 = arith.constant 0 : index
    %c0_2 = arith.constant 0 : index
    %2 = vector.load %arg2[%c0_1, %c0_2] : memref<464x128xbf16, #tpu.memory_space<vmem>>, vector<4x128xbf16>
    %cst = arith.constant dense<0.000000e+00> : vector<32x128xf32>
    %3 = tpu.matmul %1, %2, %cst {dimension_numbers = #tpu.dot_dimension_numbers<[1], [0], [0], [1], [0, 0, 1, 1], [], []>} : vector<32x4xbf16>, vector<4x128xbf16>, vector<32x128xf32> -> vector<32x128xf32>
    %c400 = arith.constant 400 : index
    %c0_3 = arith.constant 0 : index
    %4 = vector.load %arg2[%c400, %c0_3] : memref<464x128xbf16, #tpu.memory_space<vmem>>, vector<1x128xbf16>
    %5 = arith.extf %4 : vector<1x128xbf16> to vector<1x128xf32>
    %6 = vector.broadcast %5 : vector<1x128xf32> to vector<32x128xf32>
    %7 = arith.addf %3, %6 : vector<32x128xf32>
    %cst_4 = arith.constant 0.000000e+00 : f32
    %8 = vector.broadcast %cst_4 : f32 to vector<32x128xf32>
    %9 = arith.maximumf %7, %8 : vector<32x128xf32>
    %10 = arith.truncf %9 : vector<32x128xf32> to vector<32x128xbf16>
    %c16 = arith.constant 16 : index
    %c0_5 = arith.constant 0 : index
    %11 = vector.load %arg2[%c16, %c0_5] : memref<464x128xbf16, #tpu.memory_space<vmem>>, vector<128x128xbf16>
    %cst_6 = arith.constant dense<0.000000e+00> : vector<32x128xf32>
    %12 = tpu.matmul %10, %11, %cst_6 {dimension_numbers = #tpu.dot_dimension_numbers<[1], [0], [0], [1], [0, 0, 1, 1], [], []>} : vector<32x128xbf16>, vector<128x128xbf16>, vector<32x128xf32> -> vector<32x128xf32>
    %c416 = arith.constant 416 : index
    %c0_7 = arith.constant 0 : index
    %13 = vector.load %arg2[%c416, %c0_7] : memref<464x128xbf16, #tpu.memory_space<vmem>>, vector<1x128xbf16>
    %14 = arith.extf %13 : vector<1x128xbf16> to vector<1x128xf32>
    %15 = vector.broadcast %14 : vector<1x128xf32> to vector<32x128xf32>
    %16 = arith.addf %12, %15 : vector<32x128xf32>
    %cst_8 = arith.constant 0.000000e+00 : f32
    %17 = vector.broadcast %cst_8 : f32 to vector<32x128xf32>
    %18 = arith.maximumf %16, %17 : vector<32x128xf32>
    %19 = arith.truncf %18 : vector<32x128xf32> to vector<32x128xbf16>
    %c144 = arith.constant 144 : index
    %c0_9 = arith.constant 0 : index
    %20 = vector.load %arg2[%c144, %c0_9] : memref<464x128xbf16, #tpu.memory_space<vmem>>, vector<128x128xbf16>
    %cst_10 = arith.constant dense<0.000000e+00> : vector<32x128xf32>
    %21 = tpu.matmul %19, %20, %cst_10 {dimension_numbers = #tpu.dot_dimension_numbers<[1], [0], [0], [1], [0, 0, 1, 1], [], []>} : vector<32x128xbf16>, vector<128x128xbf16>, vector<32x128xf32> -> vector<32x128xf32>
    %c432 = arith.constant 432 : index
    %c0_11 = arith.constant 0 : index
    %22 = vector.load %arg2[%c432, %c0_11] : memref<464x128xbf16, #tpu.memory_space<vmem>>, vector<1x128xbf16>
    %23 = arith.extf %22 : vector<1x128xbf16> to vector<1x128xf32>
    %24 = vector.broadcast %23 : vector<1x128xf32> to vector<32x128xf32>
    %25 = arith.addf %21, %24 : vector<32x128xf32>
    %cst_12 = arith.constant 0.000000e+00 : f32
    %26 = vector.broadcast %cst_12 : f32 to vector<32x128xf32>
    %27 = arith.maximumf %25, %26 : vector<32x128xf32>
    %28 = arith.truncf %27 : vector<32x128xf32> to vector<32x128xbf16>
    %c272 = arith.constant 272 : index
    %c0_13 = arith.constant 0 : index
    %29 = vector.load %arg2[%c272, %c0_13] : memref<464x128xbf16, #tpu.memory_space<vmem>>, vector<128x128xbf16>
    %cst_14 = arith.constant dense<0.000000e+00> : vector<32x128xf32>
    %30 = tpu.matmul %28, %29, %cst_14 {dimension_numbers = #tpu.dot_dimension_numbers<[1], [0], [0], [1], [0, 0, 1, 1], [], []>} : vector<32x128xbf16>, vector<128x128xbf16>, vector<32x128xf32> -> vector<32x128xf32>
    %c448 = arith.constant 448 : index
    %c0_15 = arith.constant 0 : index
    %31 = vector.load %arg2[%c448, %c0_15] : memref<464x128xbf16, #tpu.memory_space<vmem>>, vector<1x128xbf16>
    %32 = arith.extf %31 : vector<1x128xbf16> to vector<1x128xf32>
    %33 = vector.broadcast %32 : vector<1x128xf32> to vector<32x128xf32>
    %34 = arith.addf %30, %33 : vector<32x128xf32>
    %c0_16 = arith.constant 0 : index
    %c0_17 = arith.constant 0 : index
    %35 = vector.load %arg3[%c0_16, %c0_17] : memref<32x128xf32, #tpu.memory_space<vmem>>, vector<32x128xf32>
    tpu.vector_store %arg3[%c0_16, %c0_17], %34 {strides = array<i32>} : memref<32x128xf32, #tpu.memory_space<vmem>>, vector<32x128xf32>,
    return
  }
  func.func @transform_0(%arg0: i32) -> (i32, i32) {
    %c0_i32 = arith.constant 0 : i32
    %c0_i32_0 = arith.constant 0 : i32
    return %arg0, %c0_i32 : i32, i32
  }
  func.func @transform_1(%arg0: i32) -> (i32, i32) {
    %c0_i32 = arith.constant 0 : i32
    %c0_i32_0 = arith.constant 0 : i32
    %c0_i32_1 = arith.constant 0 : i32
    return %c0_i32, %c0_i32_0 : i32, i32
  }
  func.func @transform_2(%arg0: i32) -> (i32, i32) {
    %c0_i32 = arith.constant 0 : i32
    %c0_i32_0 = arith.constant 0 : i32
    return %arg0, %c0_i32 : i32, i32
  }
}

</mosaic_0001>

<bundles_post_ra>
// kernel: qagent_forward.1
= control target key start
LH: loop header
LB: loop body
LE: loop exit
PB: predicated region body
PF: predicated region fallthrough
CT: control target
= control target key end

     0   :  { %7 = vsyncpa [#allocation3], 0  ;;  %s660_s9 = smov [#allocation2]   ;;  %s720_s0 = inlined_call_operand.vmem [shape: f32[32,4], index: 0, kind: input, shape index: {}]   ;;  %s721_s1 = inlined_call_operand.hbm [shape: bf16[464,128], index: 1, kind: input, shape index: {}]   ;;  %s722_s2 = inlined_call_operand.vmem [shape: f32[32,128], index: 2, kind: output, shape index: {}]  }
   0x1   :  { %s15_s10 = sshll.u32 %s660_s9, 4  ;;  %s636_s13 = scalar_lea.hbm %s721_s1, 3712  ;;  %s16_s10 = int_to_ptr.vmem [resolvable:$true] %s15_s10 }
   0x2   :  { %p637_p0 = scmp.ne.s32.totalorder %s721_s1, %s636_s13  ;;  %p640_p1 = scmp.lt.u32.totalorder %s636_s13, %s721_s1 }
   0x4   :  { %p642_p2 = pnand %p640_p1, %p637_p0 }
   0x6   :  { %645 = shalt.err (!%p642_p2)
}
   0x7   :  { %s646_s18 = scalar_lea.vmem %s16_s10, 3712  ;;  %p651_p4 = scmp.lt.s32.totalorder %s16_s10, %s16_s10 }
   0x8   :  { %p647_p3 = scmp.ne.s32.totalorder %s16_s10, %s646_s18  ;;  %p652_p5 = scmp.lt.s32.totalorder %s646_s18, %s646_s18 }
   0xa   :  { %p653_p6 = por %p652_p5, %p651_p4 }
   0xc   :  { %p654_p7 = pnand %p653_p6, %p647_p3 }
   0xe   :  { %657 = shalt.err (!%p654_p7)
}
   0xf   :  { %s661_s19 = smov 64   ;;  %s662_s20 = smov 4  }
  0x10   :  { %21 = dma.hbm_to_vmem [thread:$0]  %s721_s1, 3712, %s16_s10, [#allocation3], %s661_s19, %s661_s19, %s662_s20  }
  0x11   :  { %658 = dma.done.wait [#allocation3], 3712  }
  0x12   :  { %659 = vsyncadd [#allocation3], 4294963584  ;;  %vm46_vm0 = vcmask 1041408   ;;  %v32_v0 = vld [vmem:[#allocation2] sm:$0x3]  ;;  %v27_v2 = vld [vmem:[%s720_s0 + $0x8] sm:$0xff]  ;;  %v35_v22 = vlaneseq }
  0x13   :  { %v26_v1 = vld [vmem:[%s720_s0] sm:$0xff]  ;;  %vm39_vm1 = vcmask 31744   ;;  %608 = vmatprep.subr.msk.bf16.mxu0 %vm46_vm0, %v32_v0  ;;  %v48_v3 = vsel %vm46_vm0, %v32_v0, 0  ;;  %v28_v5 = vld [vmem:[%s720_s0 + $0x10] sm:$0xff]  ;;  %v29_v6 = vld [vmem:[%s720_s0 + $0x18] sm:$0xff] }
  0x14   :  { %v30_v4 = vpack.c.bf16 %v27_v2, %v26_v1  ;;  %543 = vmatpush3.bf16.msra.mxu0 %v48_v3  ;;  %v31_v7 = vpack.c.bf16 %v29_v6, %v28_v5  ;;  %v612_v8 = vld [vmem:[#allocation2 + $0x8] sm:$0xff]   ;;  %v613_v9 = vld [vmem:[#allocation2 + $0x10] sm:$0xff]   ;;  %v614_v10 = vld [vmem:[#allocation2 + $0x18] sm:$0xff]   ;;  %v36_v23 = vshrl.u32 %v35_v22, 7 }
  0x15   :  { %548 = vmatprep.subr.bf16.mxu1 %v612_v8  ;;  %v615_v11 = vld [vmem:[#allocation2 + $0x20] sm:$0xff]   ;;  %v616_v12 = vld [vmem:[#allocation2 + $0x28] sm:$0xff]   ;;  %v617_v13 = vld [vmem:[#allocation2 + $0x30] sm:$0xff]  }
  0x16   :  { %544 = vmatprep.mubr.msk.bf16.mxu0 %vm39_vm1, %v30_v4  ;;  %549 = vmatpush3.bf16.msra.mxu1 %v612_v8  ;;  %v618_v14 = vld [vmem:[#allocation2 + $0x38] sm:$0xff]   ;;  %v619_v15 = vld [vmem:[#allocation2 + $0x40] sm:$0xff]   ;;  %v620_v16 = vld [vmem:[#allocation2 + $0x48] sm:$0xff]   ;;  %v702_v26 = vsub.s32 0, %v36_v23 }
  0x17   :  { %545 = vmatmul.mubr.msk.bf16.vlgmr.msra.gmra.mrb[0].mxu0 %vm39_vm1, %v31_v7  ;;  %550 = vmatprep.subr.bf16.mxu1 %v613_v9  ;;  %v621_v17 = vld [vmem:[#allocation2 + $0x50] sm:$0xff]   ;;  %v622_v18 = vld [vmem:[#allocation2 + $0x58] sm:$0xff]   ;;  %v623_v19 = vld [vmem:[#allocation2 + $0x60] sm:$0xff]  }
  0x18   :  { %568 = vmatprep.subr.bf16.mxu0 %v620_v16  ;;  %v624_v20 = vld [vmem:[#allocation2 + $0x68] sm:$0xff]   ;;  %v625_v21 = vld [vmem:[#allocation2 + $0x70] sm:$0xff]   ;;  %v626_v42 = vld [vmem:[#allocation2 + $0x78] sm:$0xff]  }
  0x19   :  { %569 = vmatpush3.bf16.msra.mxu0 %v620_v16  ;;  %v33_v24 = vld [vmem:[#allocation2 + $0xc8] sm:$0x1]  ;;  %v627_v43 = vld [vmem:[#allocation2 + $0x80] sm:$0xff]   ;;  %v629_v45 = vld [vmem:[#allocation2 + $0x90] sm:$0xff]  }
  0x1a   :  { %551 = vmatpush3.bf16.msra.mxu1 %v613_v9  ;;  %570 = vmatprep.subr.bf16.mxu0 %v621_v17  ;;  %v34_v25 = vunpack.c.l.bf16 %v33_v24  ;;  %v628_v44 = vld [vmem:[#allocation2 + $0x88] sm:$0xff]   ;;  %v630_v46 = vld [vmem:[#allocation2 + $0x98] sm:$0xff]   ;;  %v631_v47 = vld [vmem:[#allocation2 + $0xa0] sm:$0xff]  }
  0x1b   :  { %552 = vmatprep.subr.bf16.mxu1 %v614_v10  ;;  %v632_v48 = vld [vmem:[#allocation2 + $0xa8] sm:$0xff]   ;;  %v633_v49 = vld [vmem:[#allocation2 + $0xb0] sm:$0xff]   ;;  %v634_v3 = vld [vmem:[#allocation2 + $0xb8] sm:$0xff]  }
  0x1c   :  { %v38_v27 = vrot.slane %v34_v25, %v702_v26  ;;  %v121_v50 = vld [vmem:[#allocation2 + $0xd0] sm:$0x1]  ;;  %v635_v4 = vld [vmem:[#allocation2 + $0xc0] sm:$0xff]   ;;  %v246_v5 = vld [vmem:[#allocation2 + $0xd8] sm:$0x1] }
  0x1d   :  { %571 = vmatpush3.bf16.msra.mxu0 %v621_v17  ;;  %v122_v51 = vunpack.c.l.bf16 %v121_v50  ;;  %v247_v6 = vunpack.c.l.bf16 %v246_v5  ;;  %v371_v22 = vld [vmem:[#allocation2 + $0xe0] sm:$0x1] }
  0x1e   :  { %553 = vmatpush3.bf16.msra.mxu1 %v614_v10  ;;  %572 = vmatprep.subr.bf16.mxu0 %v622_v18  ;;  %v372_v23 = vunpack.c.l.bf16 %v371_v22 }
  0x1f   :  { %554 = vmatprep.subr.bf16.mxu1 %v615_v11  ;;  %v126_v52 = vrot.slane %v122_v51, %v702_v26  ;;  %v251_v7 = vrot.slane %v247_v6, %v702_v26 }
  0x20   :  { %v376_v24 = vrot.slane %v372_v23, %v702_v26 }
  0x21   :  { %573 = vmatpush3.bf16.msra.mxu0 %v622_v18 }
  0x22   :  { %555 = vmatpush3.bf16.msra.mxu1 %v615_v11  ;;  %574 = vmatprep.subr.bf16.mxu0 %v623_v19 }
  0x23   :  { %556 = vmatprep.subr.bf16.mxu1 %v616_v12 }
  0x25   :  { %575 = vmatpush3.bf16.msra.mxu0 %v623_v19 }
  0x26   :  { %557 = vmatpush3.bf16.msra.mxu1 %v616_v12  ;;  %576 = vmatprep.subr.bf16.mxu0 %v624_v20 }
  0x27   :  { %558 = vmatprep.subr.bf16.mxu1 %v617_v13 }
  0x29   :  { %577 = vmatpush3.bf16.msra.mxu0 %v624_v20 }
  0x2a   :  { %559 = vmatpush3.bf16.msra.mxu1 %v617_v13  ;;  %578 = vmatprep.subr.bf16.mxu0 %v625_v21 }
  0x2b   :  { %560 = vmatprep.subr.bf16.mxu1 %v618_v14 }
  0x2d   :  { %579 = vmatpush3.bf16.msra.mxu0 %v625_v21 }
  0x2e   :  { %561 = vmatpush3.bf16.msra.mxu1 %v618_v14  ;;  %580 = vmatprep.subr.bf16.mxu0 %v626_v42 }
  0x2f   :  { %562 = vmatprep.subr.bf16.mxu1 %v619_v15 }
  0x31   :  { %581 = vmatpush3.bf16.msra.mxu0 %v626_v42 }
  0x32   :  { %563 = vmatpush3.bf16.msra.mxu1 %v619_v15  ;;  %582 = vmatprep.subr.bf16.mxu0 %v627_v43 }
  0x33   :  { %588 = vmatprep.subr.bf16.mxu1 %v628_v44 }
  0x35   :  { %583 = vmatpush3.bf16.msra.mxu0 %v627_v43 }
  0xea   :  { %v546_v28 = vpop.f32.mrb[0].mxu0 }
  0xeb   :  { %v93_v29 = vadd.f32 %v546_v28, %v38_v27  ;;  %v84_v30 = vpop.f32.mrb[1].mxu0 }
  0xec   :  { %v85_v31 = vadd.f32 %v84_v30, %v38_v27  ;;  %v547_v32 = vpop.f32.mrb[2].mxu0 }
  0xed   :  { %v96_v33 = vadd.f32 %v547_v32, %v38_v27  ;;  %v87_v34 = vpop.f32.mrb[3].mxu0  ;;  %v101_v36 = vmax.f32 %v93_v29, 0.0 }
  0xee   :  { %v88_v35 = vadd.f32 %v87_v34, %v38_v27  ;;  %v99_v38 = vmax.f32 %v85_v31, 0.0 }
  0xef   :  { %v102_v37 = vmax.f32 %v96_v33, 0.0 }
  0xf0   :  { %v100_v39 = vmax.f32 %v88_v35, 0.0 }
  0xf1   :  { %v104_v40 = vpack.c.bf16 %v102_v37, %v101_v36 }
  0xf2   :  { %v103_v41 = vpack.c.bf16 %v100_v39, %v99_v38 }
  0xf4   :  { %564 = vmatprep.mubr.bf16.mxu1 %v103_v41 }
  0xf5   :  { %565 = vmatmul.mubr.bf16.vlgmr.msra.gmra.mrb[0].mxu1 %v104_v40 }
  0xf6   :  { %589 = vmatpush3.bf16.msra.mxu1 %v628_v44 }
  0xf7   :  { %590 = vmatprep.subr.bf16.mxu1 %v629_v45 }
  0xfa   :  { %591 = vmatpush3.bf16.msra.mxu1 %v629_v45 }
  0xfb   :  { %592 = vmatprep.subr.bf16.mxu1 %v630_v46 }
  0xfe   :  { %593 = vmatpush3.bf16.msra.mxu1 %v630_v46 }
  0xff   :  { %594 = vmatprep.subr.bf16.mxu1 %v631_v47 }
 0x102   :  { %595 = vmatpush3.bf16.msra.mxu1 %v631_v47 }
 0x103   :  { %596 = vmatprep.subr.bf16.mxu1 %v632_v48 }
 0x106   :  { %597 = vmatpush3.bf16.msra.mxu1 %v632_v48 }
 0x107   :  { %598 = vmatprep.subr.bf16.mxu1 %v633_v49 }
 0x10a   :  { %599 = vmatpush3.bf16.msra.mxu1 %v633_v49 }
 0x10b   :  { %600 = vmatprep.subr.bf16.mxu1 %v634_v3 }
 0x10e   :  { %601 = vmatpush3.bf16.msra.mxu1 %v634_v3 }
 0x10f   :  { %602 = vmatprep.subr.bf16.mxu1 %v635_v4 }
 0x112   :  { %603 = vmatpush3.bf16.msra.mxu1 %v635_v4 }
 0x1c8   :  { %v566_v53 = vpop.f32.mrb[0].mxu1 }
 0x1c9   :  { %v218_v54 = vadd.f32 %v566_v53, %v126_v52  ;;  %v209_v55 = vpop.f32.mrb[1].mxu1 }
 0x1ca   :  { %v210_v56 = vadd.f32 %v209_v55, %v126_v52  ;;  %v567_v57 = vpop.f32.mrb[2].mxu1 }
 0x1cb   :  { %v221_v58 = vadd.f32 %v567_v57, %v126_v52  ;;  %v212_v59 = vpop.f32.mrb[3].mxu1  ;;  %v226_v61 = vmax.f32 %v218_v54, 0.0 }
 0x1cc   :  { %v213_v60 = vadd.f32 %v212_v59, %v126_v52  ;;  %v224_v63 = vmax.f32 %v210_v56, 0.0 }
 0x1cd   :  { %v227_v62 = vmax.f32 %v221_v58, 0.0 }
 0x1ce   :  { %v225_v0 = vmax.f32 %v213_v60, 0.0 }
 0x1cf   :  { %v229_v1 = vpack.c.bf16 %v227_v62, %v226_v61 }
 0x1d0   :  { %v228_v2 = vpack.c.bf16 %v225_v0, %v224_v63 }
 0x1d2   :  { %584 = vmatprep.mubr.bf16.mxu0 %v228_v2 }
 0x1d3   :  { %585 = vmatmul.mubr.bf16.vlgmr.msra.gmra.mrb[4].mxu0 %v229_v1 }
 0x2a6   :  { %v586_v8 = vpop.f32.mrb[4].mxu0 }
 0x2a7   :  { %v343_v9 = vadd.f32 %v586_v8, %v251_v7  ;;  %v334_v10 = vpop.f32.mrb[5].mxu0 }
 0x2a8   :  { %v335_v11 = vadd.f32 %v334_v10, %v251_v7  ;;  %v587_v12 = vpop.f32.mrb[6].mxu0 }
 0x2a9   :  { %v346_v13 = vadd.f32 %v587_v12, %v251_v7  ;;  %v337_v14 = vpop.f32.mrb[7].mxu0  ;;  %v351_v16 = vmax.f32 %v343_v9, 0.0 }
 0x2aa   :  { %v338_v15 = vadd.f32 %v337_v14, %v251_v7  ;;  %v349_v18 = vmax.f32 %v335_v11, 0.0 }
 0x2ab   :  { %v352_v17 = vmax.f32 %v346_v13, 0.0 }
 0x2ac   :  { %v350_v19 = vmax.f32 %v338_v15, 0.0 }
 0x2ad   :  { %v354_v20 = vpack.c.bf16 %v352_v17, %v351_v16 }
 0x2ae   :  { %v353_v21 = vpack.c.bf16 %v350_v19, %v349_v18 }
 0x2b0   :  { %604 = vmatprep.mubr.bf16.mxu1 %v353_v21 }
 0x2b1   :  { %605 = vmatmul.mubr.bf16.vlgmr.msra.gmra.mrb[4].mxu1 %v354_v20 }
 0x384   :  { %v606_v25 = vpop.f32.mrb[4].mxu1 }
 0x385   :  { %v468_v27 = vadd.f32 %v606_v25, %v376_v24  ;;  %v459_v28 = vpop.f32.mrb[5].mxu1 }
 0x386   :  { %v460_v29 = vadd.f32 %v459_v28, %v376_v24  ;;  %v607_v30 = vpop.f32.mrb[6].mxu1 }
 0x387   :  { %476 = vst [vmem:[%s722_s2 + $0x10] sm:$0xff] %v468_v27  ;;  %v471_v31 = vadd.f32 %v607_v30, %v376_v24  ;;  %v462_v32 = vpop.f32.mrb[7].mxu1 }
 0x388   :  { %474 = vst [vmem:[%s722_s2] sm:$0xff] %v460_v29  ;;  %v463_v33 = vadd.f32 %v462_v32, %v376_v24 }
 0x389   :  { %477 = vst [vmem:[%s722_s2 + $0x18] sm:$0xff] %v471_v31 }
 0x38a   :  { %475 = vst [vmem:[%s722_s2 + $0x8] sm:$0xff] %v463_v33 }
 0x38b   :  { %482 = vsyncpa [#allocation3], 1 }

</bundles_post_ra>
